<compile_context>
chip_gen: v6e
topology: v6e:2x2x1
jax: 0.10.0
libtpu: 0.0.40
codegen_flags: <defaults>
</compile_context>

<pallas_src>
import jax
import jax.numpy as jnp
from jax.experimental import pallas as pl
from jax.experimental.pallas import tpu as pltpu


def _quant_loss_kernel(packed_ref, out_ref):
    # packed_ref: SMEM f32[4] -> [rate, distortion, rate_weight, distortion_weight]
    # out_ref:    SMEM f32[1]
    out_ref[0] = packed_ref[2] * packed_ref[0] + packed_ref[3] * packed_ref[1]


_quant_loss_pallas = pl.pallas_call(
    _quant_loss_kernel,
    out_shape=jax.ShapeDtypeStruct((1,), jnp.float32),
    in_specs=[pl.BlockSpec(memory_space=pltpu.SMEM)],
    out_specs=pl.BlockSpec(memory_space=pltpu.SMEM),
    cost_estimate=pl.CostEstimate(flops=3, transcendentals=0, bytes_accessed=20),
)


@jax.jit
def quantization_loss(rate, distortion, rate_weight, distortion_weight):
    """rate, distortion: scalar float32 values. Returns a () float32 loss.

    All four operands are packed into one (4,) f32 array so the kernel pays
    for exactly one SMEM input DMA.  rate_weight / distortion_weight are
    traced runtime scalars, so one compiled kernel serves any weight values.
    """
    packed = jnp.stack(
        [
            jnp.asarray(rate, jnp.float32).reshape(()),
            jnp.asarray(distortion, jnp.float32).reshape(()),
            jnp.asarray(rate_weight, jnp.float32).reshape(()),
            jnp.asarray(distortion_weight, jnp.float32).reshape(()),
        ]
    )
    return _quant_loss_pallas(packed)[0]


# Recommended production path (per review): skip the kernel entirely and let
# XLA fuse the scalar FMA into the producers of rate/distortion.
def quantization_loss_fused(rate, distortion, rate_weight, distortion_weight):
    return rate_weight * rate + distortion_weight * distortion


if __name__ == "__main__":
    key = jax.random.PRNGKey(0)
    k_rate, k_dist = jax.random.split(key)

    # Scalar "rate" and "distortion" terms, as the PyTorch forward expects
    # (it calls .item() on them).
    rate = jax.random.uniform(k_rate, (), dtype=jnp.float32)
    distortion = jax.random.uniform(k_dist, (), dtype=jnp.float32)

    rate_weight = 0.1
    distortion_weight = 1.0

    loss = quantization_loss(rate, distortion, rate_weight, distortion_weight)
    loss = jax.block_until_ready(loss)

    # Replicate the module's host-side prints (matches PyTorch .item() usage;
    # these device->host syncs are for display only, not on the compute path).
    print("rate:", rate_weight * float(rate))
    print("distortion:", distortion_weight * float(distortion))

    # Correctness check against the plain-JAX reference.
    ref = quantization_loss_fused(rate, distortion, rate_weight, distortion_weight)
    assert jnp.allclose(loss, ref, rtol=1e-6, atol=1e-6), (loss, ref)

    print("KERNEL_OK")
</pallas_src>

<mosaic_0001>
module attributes {stable_mosaic.version = 11 : i64} {
  func.func @_quant_loss_kernel(%arg0: memref<4xf32, #tpu.memory_space<smem>>, %arg1: memref<1xf32, #tpu.memory_space<smem>>) attributes {dimension_semantics = [], scalar_prefetch = 0 : i64, scratch_operands = 0 : i64, tpu.core_type = #tpu.core_type<tc>} {
    %c2 = arith.constant 2 : index
    %0 = memref.load %arg0[%c2] : memref<4xf32, #tpu.memory_space<smem>>
    %c0 = arith.constant 0 : index
    %1 = memref.load %arg0[%c0] : memref<4xf32, #tpu.memory_space<smem>>
    %2 = arith.mulf %0, %1 : f32
    %c3 = arith.constant 3 : index
    %3 = memref.load %arg0[%c3] : memref<4xf32, #tpu.memory_space<smem>>
    %c1 = arith.constant 1 : index
    %4 = memref.load %arg0[%c1] : memref<4xf32, #tpu.memory_space<smem>>
    %5 = arith.mulf %3, %4 : f32
    %6 = arith.addf %2, %5 : f32
    %c0_0 = arith.constant 0 : index
    %7 = memref.load %arg1[%c0_0] : memref<1xf32, #tpu.memory_space<smem>>
    memref.store %6, %arg1[%c0_0] : memref<1xf32, #tpu.memory_space<smem>>
    return
  }
}

</mosaic_0001>

<bundles_post_ra>
// kernel: quantization_loss.1
= control target key start
LH: loop header
LB: loop body
LE: loop exit
PB: predicated region body
PF: predicated region fallthrough
CT: control target
= control target key end

     0   :  { %6 = vsyncpa [#allocation4], 0  ;;  %s92_s0 = inlined_call_operand.vmem [shape: f32[4], index: 0, kind: input, shape index: {}]   ;;  %s93_s1 = inlined_call_operand.hbm [shape: f32[1], index: 1, kind: output, shape index: {}]  }
   0x1   :  { %7 = vsyncpa [#allocation3], 0  ;;  %s14_s8 = sshll.u32 %s92_s0, 4  ;;  %s15_s8 = int_to_ptr.vmem [resolvable:$true] %s14_s8 }
   0x2   :  { %s50_s9 = scalar_lea.vmem %s15_s8, 16  ;;  %p55_p1 = scmp.lt.s32.totalorder %s15_s8, %s15_s8 }
   0x3   :  { %p51_p0 = scmp.ne.s32.totalorder %s15_s8, %s50_s9  ;;  %p56_p2 = scmp.lt.s32.totalorder %s50_s9, %s50_s9 }
   0x5   :  { %p57_p3 = por %p56_p2, %p55_p1 }
   0x7   :  { %p58_p4 = pnand %p57_p3, %p51_p0 }
   0x9   :  { %61 = shalt.err (!%p58_p4)
}
   0xa   :  { %s74_s10 = smov [#allocation2]  }
   0xb   :  { %17 = dma.vmem_to_smem %s15_s8, 16, %s74_s10, [#allocation4]  }
   0xc   :  { %70 = dma.done.wait [#allocation4], 16  }
   0xd   :  { %71 = vsyncadd [#allocation4], 4294967280 }
   0xe   :  { %21 = sfence }
   0xf   :  { %s45_s11 = sld [smem:[#allocation2 + $0x2]]  ;;  %s75_s17 = smov [#allocation5]  }
  0x10   :  { %s23_s12 = sld [smem:[#allocation2]] }
  0x11   :  { %s46_s13 = sld [smem:[#allocation2 + $0x3]] }
  0x12   :  { %s47_s14 = sld [smem:[#allocation2 + $0x1]] }
  0x16   :  { %s24_s15 = smul.f32 %s45_s11, %s23_s12 }
  0x18   :  { %s27_s16 = smul.f32 %s47_s14, %s46_s13 }
  0x1a   :  { %s28_s0 = sadd.f32 %s27_s16, %s24_s15 }
  0x1c   :  { %30 = sst [smem:[#allocation5]] %s28_s0 }
  0x1d   :  { %38 = dma.smem_to_hbm %s75_s17, 16, %s93_s1, [#allocation3]  }
  0x1e   :  { %72 = dma.done.wait [#allocation3], 16  }
  0x1f   :  { %73 = vsyncadd [#allocation3], 4294967280 }
  0x20   :  { %42 = sfence }
  0x21   :  { %43 = vsyncpa [#allocation3], 1 }
  0x22   :  { %44 = vsyncpa [#allocation4], 1 }

</bundles_post_ra>
